<compile_context>
chip_gen: v7x
topology: tpu7x:2x2x1
jax: 0.10.0
libtpu: 0.0.40
codegen_flags: <defaults>
</compile_context>

<pallas_src>
import jax
import jax.numpy as jnp
from jax import lax
from jax.experimental import pallas as pl
from jax.experimental.pallas import tpu as pltpu


def medrnn_gru_kernel(lens_ref, vemb_ref, ivl_ref, wt_ref, bt_ref,
                      wiv_ref, wit_ref, bih_ref, whh_ref, bhh_ref,
                      out_ref, gi_ref):
    B, H = out_ref.shape
    BT = gi_ref.shape[0]
    T = BT // B

    # ---- hoisted input-to-hidden path (independent of the hidden state) ----
    t_emb = ivl_ref[...] * wt_ref[...] + bt_ref[...]                  # (BT, Ts)
    gi_ref[...] = (
        jnp.dot(vemb_ref[...], wiv_ref[...],
                preferred_element_type=jnp.float32)
        + jnp.dot(t_emb, wit_ref[...], preferred_element_type=jnp.float32)
        + bih_ref[...])                                               # (BT, 3H)

    # Keep the recurrent weights resident across all serial steps.
    whh = whh_ref[...]                                                # (H, 3H)
    bhh = bhh_ref[...]                                                # (1, 3H)

    def gru_step(b, t, h):
        idx = b * T + t
        gi = gi_ref[pl.ds(idx, 1), :]                                 # (1, 3H)
        gh = jnp.dot(h, whh, preferred_element_type=jnp.float32) + bhh
        r = jax.nn.sigmoid(gi[:, 0:H] + gh[:, 0:H])
        z = jax.nn.sigmoid(gi[:, H:2 * H] + gh[:, H:2 * H])
        n = jnp.tanh(gi[:, 2 * H:3 * H] + r * gh[:, 2 * H:3 * H])
        return (1.0 - z) * n + z * h

    def patient_body(b, h):
        # zip(visit_emb_i, range(len)) -> min(T, lens[b]) real steps only.
        n_visits = jnp.minimum(lens_ref[b], T)
        h = lax.fori_loop(0, n_visits, lambda t, hh: gru_step(b, t, hh), h)
        out_ref[pl.ds(b, 1), :] = h
        return h                                # hidden carries across patients

    lax.fori_loop(0, B, patient_body, jnp.zeros((1, H), jnp.float32))


def medrnn_gru(visit_emb, lens, intervals, params):
    """MedRNN forward (GRU, time_aware=True). Returns (B, hidden_size)."""
    B, T, Vs = visit_emb.shape
    H = params["whhT"].shape[0]
    vemb_flat = visit_emb.reshape(B * T, Vs).astype(jnp.float32)
    ivl_col = intervals.reshape(B * T, 1).astype(jnp.float32)
    smem = pl.BlockSpec(memory_space=pltpu.MemorySpace.SMEM)
    vmem = pl.BlockSpec(memory_space=pltpu.MemorySpace.VMEM)
    # TODO(synk): at production B*T, tile vemb/gi over patient chunks (grid +
    # BlockSpec or manual DMA) instead of whole-array VMEM residency (v7x VMEM).
    return pl.pallas_call(
        medrnn_gru_kernel,
        out_shape=jax.ShapeDtypeStruct((B, H), jnp.float32),
        in_specs=[smem] + [vmem] * 9,
        out_specs=vmem,
        scratch_shapes=[pltpu.VMEM((B * T, 3 * H), jnp.float32)],
    )(lens.astype(jnp.int32), vemb_flat, ivl_col,
      params["wt"], params["bt"], params["wivT"], params["witT"],
      params["bih"], params["whhT"], params["bhh"])


# ----------------------------------------------------------------------------
# Pure-JAX reference (mirrors the PyTorch forward exactly)
# ----------------------------------------------------------------------------
def reference_forward(visit_emb, lens, intervals, params):
    B, T, Vs = visit_emb.shape
    H = params["whhT"].shape[0]
    h = jnp.zeros((H,), jnp.float32)
    outs = []
    for b in range(B):
        for t in range(min(T, int(lens[b]))):
            x_v = visit_emb[b, t]
            t_emb = intervals[b, t] * params["wt"][0] + params["bt"][0]
            gi = (x_v @ params["wivT"] + t_emb @ params["witT"]
                  + params["bih"][0])
            gh = h @ params["whhT"] + params["bhh"][0]
            r = jax.nn.sigmoid(gi[:H] + gh[:H])
            z = jax.nn.sigmoid(gi[H:2 * H] + gh[H:2 * H])
            n = jnp.tanh(gi[2 * H:] + r * gh[2 * H:])
            h = (1.0 - z) * n + z * h
        outs.append(h)
    return jnp.stack(outs)


# ----------------------------------------------------------------------------
if __name__ == "__main__":
    B, T = 2, 8
    visit_size = 32
    time_size = 8
    hidden_size = 32

    Vs, Ts, H = visit_size, time_size, hidden_size
    D = Vs + Ts

    key = jax.random.PRNGKey(0)
    ks = jax.random.split(key, 10)

    def uni(k, shape, fan_in):
        bound = 1.0 / jnp.sqrt(jnp.float32(fan_in))
        return jax.random.uniform(k, shape, jnp.float32, -bound, bound)

    # time_embedding = nn.Linear(1, time_size): weight (Ts,1), bias (Ts,)
    wt = uni(ks[0], (1, Ts), 1)            # weight.T -> (1, Ts)
    bt = uni(ks[1], (1, Ts), 1)            # bias     -> (1, Ts)

    # nn.GRUCell(input_size=Vs+Ts, hidden_size=H); PyTorch layout (3H, D), r|z|n
    w_ih = uni(ks[2], (3 * H, D), H)
    w_hh = uni(ks[3], (3 * H, H), H)
    b_ih = uni(ks[4], (1, 3 * H), H)
    b_hh = uni(ks[5], (1, 3 * H), H)

    params = dict(
        wt=wt, bt=bt,
        wivT=w_ih[:, :Vs].T,               # (Vs, 3H)  visit-part of W_ih
        witT=w_ih[:, Vs:].T,               # (Ts, 3H)  time-part of W_ih
        bih=b_ih,
        whhT=w_hh.T,                       # (H, 3H)
        bhh=b_hh,
    )

    # Inputs: visit_emb (B,T,Vs), lens (B,), intervals (B,T)
    visit_emb = 0.1 * jax.random.normal(ks[6], (B, T, Vs), jnp.float32)
    lens = jnp.array([5, 8], dtype=jnp.int32)
    intervals = jax.random.uniform(ks[7], (B, T), jnp.float32, 0.0, 10.0)

    out = medrnn_gru(visit_emb, lens, intervals, params)
    out = jax.block_until_ready(out)

    ref = reference_forward(visit_emb, lens, intervals, params)
    assert out.shape == (B, hidden_size)
    assert jnp.allclose(out, ref, rtol=1e-4, atol=1e-4), (out, ref)
    print("KERNEL_OK")
</pallas_src>

<mosaic_0001>
module attributes {stable_mosaic.version = 11 : i64} {
  func.func @medrnn_gru_kernel(%arg0: memref<2xi32, #tpu.memory_space<smem>>, %arg1: memref<16x32xf32, #tpu.memory_space<vmem>>, %arg2: memref<16x1xf32, #tpu.memory_space<vmem>>, %arg3: memref<1x8xf32, #tpu.memory_space<vmem>>, %arg4: memref<1x8xf32, #tpu.memory_space<vmem>>, %arg5: memref<32x96xf32, #tpu.memory_space<vmem>>, %arg6: memref<8x96xf32, #tpu.memory_space<vmem>>, %arg7: memref<1x96xf32, #tpu.memory_space<vmem>>, %arg8: memref<32x96xf32, #tpu.memory_space<vmem>>, %arg9: memref<1x96xf32, #tpu.memory_space<vmem>>, %arg10: memref<2x32xf32, #tpu.memory_space<vmem>>, %arg11: memref<16x96xf32, #tpu.memory_space<vmem>>) attributes {dimension_semantics = [], scalar_prefetch = 0 : i64, scratch_operands = 1 : i64, tpu.core_type = #tpu.core_type<tc>} {
    %c0 = arith.constant 0 : index
    %c0_0 = arith.constant 0 : index
    %0 = vector.load %arg2[%c0, %c0_0] : memref<16x1xf32, #tpu.memory_space<vmem>>, vector<16x1xf32>
    %c0_1 = arith.constant 0 : index
    %c0_2 = arith.constant 0 : index
    %1 = vector.load %arg3[%c0_1, %c0_2] : memref<1x8xf32, #tpu.memory_space<vmem>>, vector<1x8xf32>
    %2 = vector.broadcast %0 : vector<16x1xf32> to vector<16x8xf32>
    %3 = vector.broadcast %1 : vector<1x8xf32> to vector<16x8xf32>
    %4 = arith.mulf %2, %3 : vector<16x8xf32>
    %c0_3 = arith.constant 0 : index
    %c0_4 = arith.constant 0 : index
    %5 = vector.load %arg4[%c0_3, %c0_4] : memref<1x8xf32, #tpu.memory_space<vmem>>, vector<1x8xf32>
    %6 = vector.broadcast %5 : vector<1x8xf32> to vector<16x8xf32>
    %7 = arith.addf %4, %6 : vector<16x8xf32>
    %c0_5 = arith.constant 0 : index
    %c0_6 = arith.constant 0 : index
    %8 = vector.load %arg1[%c0_5, %c0_6] : memref<16x32xf32, #tpu.memory_space<vmem>>, vector<16x32xf32>
    %c0_7 = arith.constant 0 : index
    %c0_8 = arith.constant 0 : index
    %9 = vector.load %arg5[%c0_7, %c0_8] : memref<32x96xf32, #tpu.memory_space<vmem>>, vector<32x96xf32>
    %cst = arith.constant dense<0.000000e+00> : vector<16x96xf32>
    %10 = tpu.matmul %8, %9, %cst {dimension_numbers = #tpu.dot_dimension_numbers<[1], [0], [0], [1], [0, 0, 1, 1], [], []>} : vector<16x32xf32>, vector<32x96xf32>, vector<16x96xf32> -> vector<16x96xf32>
    %c0_9 = arith.constant 0 : index
    %c0_10 = arith.constant 0 : index
    %11 = vector.load %arg6[%c0_9, %c0_10] : memref<8x96xf32, #tpu.memory_space<vmem>>, vector<8x96xf32>
    %cst_11 = arith.constant dense<0.000000e+00> : vector<16x96xf32>
    %12 = tpu.matmul %7, %11, %cst_11 {dimension_numbers = #tpu.dot_dimension_numbers<[1], [0], [0], [1], [0, 0, 1, 1], [], []>} : vector<16x8xf32>, vector<8x96xf32>, vector<16x96xf32> -> vector<16x96xf32>
    %13 = arith.addf %10, %12 : vector<16x96xf32>
    %c0_12 = arith.constant 0 : index
    %c0_13 = arith.constant 0 : index
    %14 = vector.load %arg7[%c0_12, %c0_13] : memref<1x96xf32, #tpu.memory_space<vmem>>, vector<1x96xf32>
    %15 = vector.broadcast %14 : vector<1x96xf32> to vector<16x96xf32>
    %16 = arith.addf %13, %15 : vector<16x96xf32>
    %c0_14 = arith.constant 0 : index
    %c0_15 = arith.constant 0 : index
    %17 = vector.load %arg11[%c0_14, %c0_15] : memref<16x96xf32, #tpu.memory_space<vmem>>, vector<16x96xf32>
    tpu.vector_store %arg11[%c0_14, %c0_15], %16 {strides = array<i32>} : memref<16x96xf32, #tpu.memory_space<vmem>>, vector<16x96xf32>,
    %c0_16 = arith.constant 0 : index
    %c0_17 = arith.constant 0 : index
    %18 = vector.load %arg8[%c0_16, %c0_17] : memref<32x96xf32, #tpu.memory_space<vmem>>, vector<32x96xf32>
    %c0_18 = arith.constant 0 : index
    %c0_19 = arith.constant 0 : index
    %19 = vector.load %arg9[%c0_18, %c0_19] : memref<1x96xf32, #tpu.memory_space<vmem>>, vector<1x96xf32>
    %cst_20 = arith.constant 0.000000e+00 : f32
    %20 = vector.broadcast %cst_20 : f32 to vector<1x32xf32>
    %c0_i32 = arith.constant 0 : i32
    %c2_i32 = arith.constant 2 : i32
    %21 = arith.addi %c0_i32, %c2_i32 : i32
    %c1_i32 = arith.constant 1 : i32
    %22 = scf.for %arg12 = %c0_i32 to %21 step %c1_i32 iter_args(%arg13 = %20) -> (vector<1x32xf32>)  : i32 {
      %23 = arith.index_cast %arg12 : i32 to index
      %24 = memref.load %arg0[%23] : memref<2xi32, #tpu.memory_space<smem>>
      %c8_i32 = arith.constant 8 : i32
      %25 = arith.minsi %24, %c8_i32 : i32
      %c0_i32_22 = arith.constant 0 : i32
      %26 = arith.subi %25, %c0_i32_22 : i32
      %27 = arith.addi %c0_i32_22, %26 : i32
      %c1_i32_23 = arith.constant 1 : i32
      %28 = scf.for %arg14 = %c0_i32_22 to %27 step %c1_i32_23 iter_args(%arg15 = %arg13) -> (vector<1x32xf32>)  : i32 {
        %c8_i32_25 = arith.constant 8 : i32
        %31 = arith.muli %arg12, %c8_i32_25 : i32
        %32 = arith.addi %31, %arg14 : i32
        %33 = arith.index_cast %32 : i32 to index
        %c0_26 = arith.constant 0 : index
        %34 = vector.load %arg11[%33, %c0_26] : memref<16x96xf32, #tpu.memory_space<vmem>>, vector<1x96xf32>
        %cst_27 = arith.constant dense<0.000000e+00> : vector<1x96xf32>
        %35 = tpu.matmul %arg15, %18, %cst_27 {dimension_numbers = #tpu.dot_dimension_numbers<[1], [0], [0], [1], [0, 0, 1, 1], [], []>} : vector<1x32xf32>, vector<32x96xf32>, vector<1x96xf32> -> vector<1x96xf32>
        %36 = arith.addf %35, %19 : vector<1x96xf32>
        %37 = vector.extract_strided_slice %34 {offsets = [0, 0], sizes = [1, 32], strides = [1, 1]} : vector<1x96xf32> to vector<1x32xf32>
        %38 = vector.extract_strided_slice %36 {offsets = [0, 0], sizes = [1, 32], strides = [1, 1]} : vector<1x96xf32> to vector<1x32xf32>
        %39 = arith.addf %37, %38 : vector<1x32xf32>
        %40 = arith.negf %39 : vector<1x32xf32>
        %41 = math.exp %40 : vector<1x32xf32>
        %cst_28 = arith.constant 1.000000e+00 : f32
        %42 = vector.broadcast %cst_28 : f32 to vector<1x32xf32>
        %43 = arith.addf %42, %41 : vector<1x32xf32>
        %44 = arith.divf %42, %43 : vector<1x32xf32>
        %45 = vector.extract_strided_slice %34 {offsets = [0, 32], sizes = [1, 32], strides = [1, 1]} : vector<1x96xf32> to vector<1x32xf32>
        %46 = vector.extract_strided_slice %36 {offsets = [0, 32], sizes = [1, 32], strides = [1, 1]} : vector<1x96xf32> to vector<1x32xf32>
        %47 = arith.addf %45, %46 : vector<1x32xf32>
        %48 = arith.negf %47 : vector<1x32xf32>
        %49 = math.exp %48 : vector<1x32xf32>
        %cst_29 = arith.constant 1.000000e+00 : f32
        %50 = vector.broadcast %cst_29 : f32 to vector<1x32xf32>
        %51 = arith.addf %50, %49 : vector<1x32xf32>
        %52 = arith.divf %50, %51 : vector<1x32xf32>
        %53 = vector.extract_strided_slice %34 {offsets = [0, 64], sizes = [1, 32], strides = [1, 1]} : vector<1x96xf32> to vector<1x32xf32>
        %54 = vector.extract_strided_slice %36 {offsets = [0, 64], sizes = [1, 32], strides = [1, 1]} : vector<1x96xf32> to vector<1x32xf32>
        %55 = arith.mulf %44, %54 : vector<1x32xf32>
        %56 = arith.addf %53, %55 : vector<1x32xf32>
        %57 = math.tanh %56 : vector<1x32xf32>
        %cst_30 = arith.constant 1.000000e+00 : f32
        %58 = vector.broadcast %cst_30 : f32 to vector<1x32xf32>
        %59 = arith.subf %58, %52 : vector<1x32xf32>
        %60 = arith.mulf %59, %57 : vector<1x32xf32>
        %61 = arith.mulf %52, %arg15 : vector<1x32xf32>
        %62 = arith.addf %60, %61 : vector<1x32xf32>
        scf.yield %62 : vector<1x32xf32>
      }
      %29 = arith.index_cast %arg12 : i32 to index
      %c0_24 = arith.constant 0 : index
      %30 = vector.load %arg10[%29, %c0_24] : memref<2x32xf32, #tpu.memory_space<vmem>>, vector<1x32xf32>
      tpu.vector_store %arg10[%29, %c0_24], %28 {strides = array<i32>} : memref<2x32xf32, #tpu.memory_space<vmem>>, vector<1x32xf32>,
      scf.yield %28 : vector<1x32xf32>
    }
    %c2_i32_21 = arith.constant 2 : i32
    return
  }
}

</mosaic_0001>

<bundles_post_ra>
// kernel: tpu_custom_call.1
= control target key start
LH: loop header
LB: loop body
LE: loop exit
PB: predicated region body
PF: predicated region fallthrough
CT: control target
= control target key end

     0   :  { %15 = vsyncpa [#allocation6], 0  ;;  %s950_s0 = inlined_call_operand.vmem [shape: s32[2], index: 0, kind: input, shape index: {}]   ;;  %s951_s1 = inlined_call_operand.hbm [shape: f32[16,32], index: 1, kind: input, shape index: {}]   ;;  %s952_s2 = inlined_call_operand.vmem [shape: f32[16,1], index: 2, kind: input, shape index: {}]   ;;  %s953_s3 = inlined_call_operand.vmem [shape: f32[1,8], index: 3, kind: input, shape index: {}]   ;;  %s954_s4 = inlined_call_operand.vmem [shape: f32[1,8], index: 4, kind: input, shape index: {}]   ;;  %s955_s5 = inlined_call_operand.vmem [shape: f32[32,96], index: 5, kind: input, shape index: {}]   ;;  %s956_s6 = inlined_call_operand.hbm [shape: f32[8,96], index: 6, kind: input, shape index: {}]   ;;  %s957_s7 = inlined_call_operand.vmem [shape: f32[1,96], index: 7, kind: input, shape index: {}]   ;;  %s958_s8 = inlined_call_operand.hbm [shape: f32[32,96], index: 8, kind: input, shape index: {}]   ;;  %s959_s9 = inlined_call_operand.vmem [shape: f32[1,96], index: 9, kind: input, shape index: {}]   ;;  %s960_s10 = inlined_call_operand.hbm [shape: f32[2,32], index: 10, kind: output, shape index: {}]  }
   0x1   :  { %16 = vsyncpa [#allocation4], 0 }
   0x2   :  { %17 = vsyncpa [#allocation9], 0 }
   0x3   :  { %18 = vsyncpa [#allocation5], 0  ;;  %s25_s15 = sshll.u32 %s950_s0, 4  ;;  %s752_s16 = smov [#allocation8]   ;;  %s26_s15 = int_to_ptr.vmem [resolvable:$true] %s25_s15 }
   0x4   :  { %s55_s17 = sshll.u32 %s752_s16, 4  ;;  %s604_s20 = scalar_lea.hbm %s956_s6, 128  ;;  %s56_s17 = int_to_ptr.vmem [resolvable:$true] %s55_s17 }
   0x5   :  { %p605_p0 = scmp.ne.s32.totalorder %s956_s6, %s604_s20  ;;  %p608_p1 = scmp.lt.u32.totalorder %s604_s20, %s956_s6 }
   0x7   :  { %p610_p2 = pnand %p608_p1, %p605_p0 }
   0x9   :  { %613 = shalt.err (!%p610_p2)
}
   0xa   :  { %s614_s25 = scalar_lea.vmem %s56_s17, 128  ;;  %p619_p4 = scmp.lt.s32.totalorder %s56_s17, %s56_s17 }
   0xb   :  { %p615_p3 = scmp.ne.s32.totalorder %s56_s17, %s614_s25  ;;  %p620_p5 = scmp.lt.s32.totalorder %s614_s25, %s614_s25 }
   0xd   :  { %p621_p6 = por %p620_p5, %p619_p4 }
   0xf   :  { %p622_p7 = pnand %p621_p6, %p615_p3 }
  0x11   :  { %625 = shalt.err (!%p622_p7)
}
  0x12   :  { %58 = dma.hbm_to_vmem [thread:$0]  %s956_s6, 128, %s56_s17, [#allocation9]  }
  0x13   :  { %s626_s27 = scalar_lea.vmem %s26_s15, 16  ;;  %p631_p9 = scmp.lt.s32.totalorder %s26_s15, %s26_s15 }
  0x14   :  { %p627_p8 = scmp.ne.s32.totalorder %s26_s15, %s626_s27  ;;  %p632_p10 = scmp.lt.s32.totalorder %s626_s27, %s626_s27 }
  0x16   :  { %p633_p11 = por %p632_p10, %p631_p9 }
  0x18   :  { %p634_p12 = pnand %p633_p11, %p627_p8 }
  0x1a   :  { %637 = shalt.err (!%p634_p12)
}
  0x1b   :  { %s753_s28 = smov [#allocation3]   ;;  %s754_s29 = smov [#allocation7]  }
  0x1c   :  { %28 = dma.vmem_to_smem %s26_s15, 16, %s753_s28, [#allocation6]  }
  0x1d   :  { %s34_s30 = sshll.u32 %s754_s29, 4  ;;  %s638_s13 = scalar_lea.hbm %s951_s1, 256  ;;  %s35_s30 = int_to_ptr.vmem [resolvable:$true] %s34_s30 }
  0x1e   :  { %p639_p13 = scmp.ne.s32.totalorder %s951_s1, %s638_s13  ;;  %p642_p0 = scmp.lt.u32.totalorder %s638_s13, %s951_s1 }
  0x20   :  { %p644_p1 = pnand %p642_p0, %p639_p13 }
  0x22   :  { %647 = shalt.err (!%p644_p1)
}
  0x23   :  { %s648_s18 = scalar_lea.vmem %s35_s30, 256  ;;  %p653_p3 = scmp.lt.s32.totalorder %s35_s30, %s35_s30 }
  0x24   :  { %p649_p2 = scmp.ne.s32.totalorder %s35_s30, %s648_s18  ;;  %p654_p4 = scmp.lt.s32.totalorder %s648_s18, %s648_s18 }
  0x26   :  { %p655_p5 = por %p654_p4, %p653_p3 }
  0x28   :  { %p656_p6 = pnand %p655_p5, %p649_p2 }
  0x2a   :  { %659 = shalt.err (!%p656_p6)
}
  0x2b   :  { %s755_s15 = smov 128   ;;  %s756_s19 = smov 8  }
  0x2c   :  { %40 = dma.hbm_to_vmem [thread:$0]  %s951_s1, 256, %s35_s30, [#allocation4], %s755_s15, %s755_s15, %s756_s19  }
  0x2d   :  { %s757_s22 = smov [#allocation10]   ;;  %s660_s0 = scalar_lea.hbm %s958_s8, 512 }
  0x2e   :  { %s66_s23 = sshll.u32 %s757_s22, 4  ;;  %p661_p7 = scmp.ne.s32.totalorder %s958_s8, %s660_s0  ;;  %s67_s23 = int_to_ptr.vmem [resolvable:$true] %s66_s23 }
  0x2f   :  { %p664_p8 = scmp.lt.u32.totalorder %s660_s0, %s958_s8 }
  0x31   :  { %p666_p9 = pnand %p664_p8, %p661_p7 }
  0x33   :  { %669 = shalt.err (!%p666_p9)
}
  0x34   :  { %s670_s11 = scalar_lea.vmem %s67_s23, 512  ;;  %p675_p11 = scmp.lt.s32.totalorder %s67_s23, %s67_s23 }
  0x35   :  { %p671_p10 = scmp.ne.s32.totalorder %s67_s23, %s670_s11  ;;  %p676_p12 = scmp.lt.s32.totalorder %s670_s11, %s670_s11 }
  0x37   :  { %p677_p13 = por %p676_p12, %p675_p11 }
  0x39   :  { %p678_p0 = pnand %p677_p13, %p671_p10 }
  0x3b   :  { %681 = shalt.err (!%p678_p0)
}
  0x3c   :  { %72 = dma.hbm_to_vmem [thread:$0]  %s958_s8, 512, %s67_s23, [#allocation9], %s755_s15, %s755_s15, %s756_s19  }
  0x3d   :  { %724 = dma.done.wait [#allocation6], 16  }
  0x3e   :  { %725 = vsyncadd [#allocation6], 4294967280 }
  0x3f   :  { %726 = dma.done.wait [#allocation4], 256  }
  0x40   :  { %727 = vsyncadd [#allocation4], 4294967040 }
  0x41   :  { %728 = dma.done.wait [#allocation9], 640  }
  0x42   :  { %729 = vsyncadd [#allocation9], 4294966656 }
  0x43   :  { %87 = sfence }
  0x44   :  { %v88_v0 = vld [vmem:[%s952_s2] sm:$0xff]  ;;  %v758_v2 = vmov 0   ;;  %v121_v3 = vld [vmem:[%s955_s5 + $0x8] sm:$0xff]  ;;  %v122_v5 = vld [vmem:[%s955_s5 + $0x10] sm:$0xff]  ;;  %vm207_vm0 = vcmask 261120   ;;  %vm125_vm1 = vcmask 64512  }
  0x45   :  { %v120_v1 = vld [vmem:[%s955_s5] sm:$0xff]  ;;  %597 = vset.pattern.permute.xlu0 %v758_v2  ;;  %v123_v6 = vld [vmem:[%s955_s5 + $0x18] sm:$0xff]  ;;  %v89_v7 = vld [vmem:[%s952_s2 + $0x8] sm:$0xff]  ;;  %vm298_vm2 = vcmask 785408   ;;  %v902_v34 = vmov 0.0   ;;  %s904_s0 = smov 0  }
  0x46   :  { %93 = vperm.xlu0 %597, %v88_v0   ;;  %v527_v4 = vpack.c.bf16 %v121_v3, %v120_v1  ;;  %v531_v8 = vpack.c.bf16 %v123_v6, %v122_v5  ;;  %v124_v9 = vld [vmem:[#allocation8] sm:$0xff]  ;;  %v118_v10 = vld [vmem:[#allocation7] sm:$0xff]  ;;  %v119_v11 = vld [vmem:[#allocation7 + $0x8] sm:$0xff] }
  0x47   :  { %500 = vmatprep.subr.mxu1 %v124_v9  ;;  %513 = vmatprep.mubr.msk.f32.mxu0 %vm207_vm0, %v118_v10  ;;  %v472_v12 = vld [vmem:[%s953_s3] ss:$0 sm:$0xff]  ;;  %v886_v22 = vld [vmem:[#allocation10] sm:$0xff]  ;;  %v888_v23 = vld [vmem:[#allocation10 + $0x8] sm:$0xff] }
  0x48   :  { %528 = vmatprep.subr.bf16.mxu0 %v527_v4  ;;  %501 = vmatpush3.msra.mxu1 %v124_v9  ;;  %v473_v14 = vld [vmem:[%s954_s4] ss:$0 sm:$0xff]  ;;  %v890_v24 = vld [vmem:[#allocation10 + $0x10] sm:$0xff] }
  0x49   :  { %530 = vmatpush3.bf16.msra.mxu0 %v527_v4  ;;  %v892_v25 = vld [vmem:[#allocation10 + $0x18] sm:$0xff] }
  0x4a   :  { %98 = vperm.xlu0 %597, %v89_v7   ;;  %532 = vmatprep.subr.bf16.mxu0 %v531_v8  ;;  %v897_v26 = vld [vmem:[%s959_s9] sm:$0x1] }
  0x4b   :  { %v478_v28 = vld [vmem:[%s957_s7] ss:$0 sm:$0xff] }
  0x4d   :  { %534 = vmatpush3.bf16.msra.mxu0 %v531_v8 }
  0x50   :  { %514 = vmatmul.mubr.msk.f32.vlgmr.msra.gmra.mrb[0].mxu0 %vm207_vm0, %v119_v11 }
  0xc5   :  { %v94_v13 = vpop.permute.xlu0 %93 }
  0xc6   :  { %v107_v15 = vmul.f32 %v472_v12, %v94_v13 }
  0xc8   :  { %v116_v16 = vadd.f32 %v473_v14, %v107_v15 }
  0xc9   :  { %v99_v17 = vpop.permute.xlu0 %98 }
  0xca   :  { %v108_v18 = vmul.f32 %v472_v12, %v99_v17  ;;  %502 = vmatprep.mubr.msk.f32.mxu1 %vm125_vm1, %v116_v16 }
  0xcc   :  { %v117_v19 = vadd.f32 %v473_v14, %v108_v18 }
  0xce   :  { %503 = vmatmul.mubr.msk.f32.vlgmr.msra.gmra.mrb[0].mxu1 %vm125_vm1, %v117_v19 }
 0x123   :  { %v515_v20 = vpop.f32.mrb[0].mxu0 }
 0x124   :  { %v280_v21 = vpop.f32.mrb[1].mxu0 }
 0x1a1   :  { %v504_v27 = vpop.f32.mrb[0].mxu1 }
 0x1a2   :  { %v286_v29 = vadd.f32 %v515_v20, %v504_v27  ;;  %v198_v30 = vpop.f32.mrb[1].mxu1 }
 0x1a3   :  { %v281_v31 = vadd.f32 %v280_v21, %v198_v30 }
 0x1a4   :  { %v297_v32 = vadd.f32 %v478_v28, %v286_v29 }
 0x1a5   :  { %v296_v33 = vadd.f32 %v478_v28, %v281_v31 }
 0x1a6   :  { %300 = vst.msk [vmem:[#allocation2 + $0x8] sm:$0xff] %vm298_vm2, %v297_v32 }
 0x1a7   :  { %299 = vst.msk [vmem:[#allocation2] sm:$0xff] %vm298_vm2, %v296_v33 }
 0x1a8 LB: > { %s313_s7 = sld [smem:[#allocation3 + %s738_s0]]  ;;  %v748_v35 = vmov %v734_v34   ;;  %s738_s0 = sphi %s904_s0, %s311_s0   ;;  %v734_v34 = vphi %v902_v34, %v961_v34  }
 0x1ae   : > { %p314_p1 = scmp.lt.s32.totalorder %s313_s7, 8  ;;  %p483_p2 = scmp.le.s32.totalorder %s313_s7, 0 }
 0x1af   : > { %v740_v36 = vmov (!%p483_p2), %v734_v34   ;;  %s913_s26 = smov (!%p483_p2), 0  }
 0x1b0   : > { %s911_s9 = scalar_select %p314_p1, %s313_s7, 8 }
 0x1b1   : > { %459 = sbr.rel (%p483_p2) target bundleno = 1135 (0x46f), region = 86 }
 0x1b8 LB: >> { %v536_v37 = vpack.c.bf16 %v888_v23, %v886_v22  ;;  %v759_v38 = vmov 0.0|0.0   ;;  %s760_s27 = smov 96   ;;  %v539_v39 = vpack.c.bf16 %v892_v25, %v890_v24  ;;  %vm761_vm3 = vmmov 0   ;;  %s763_s28 = smov 64   ;;  %s746_s26 = sphi %s913_s26, %s319_s26   ;;  %v742_v36 = vphi %v740_v36, %v741_v36  }
 0x1b9   : >> { %535 = vmatprep.subr.bf16.mxu0 %v759_v38  ;;  %328 = vrot.lane.b32.xlu0 %v742_v36, %s760_s27  ;;  %v762_v40 = vmov 0.0   ;;  %s480_s29 = sshll.u32 %s738_s0, 3 }
 0x1ba   : >> { %537 = vmatpush3.bf16.msra.mxu0 %v536_v37  ;;  %524 = vmatprep.mubr.msk.f32.mxu0 %vm761_vm3, %v762_v40  ;;  %s324_s11 = sadd.s32 %s746_s26, %s480_s29  ;;  %s319_s26 = sadd.s32 1, %s746_s26  }
 0x1bb   : >> { %538 = vmatprep.subr.bf16.mxu0 %v759_v38  ;;  %s325_s1 = scalar_lea.vmem [#allocation2], %s324_s11  ;;  %p318_p3 = scmp.ge.s32.totalorder %s319_s26, %s911_s9 }
 0x1bc   : >> { %v326_v45 = vld [vmem:[%s325_s1] sm:$0x1] }
 0x1be   : >> { %540 = vmatpush3.bf16.msra.mxu0 %v539_v39 }
 0x22b   : >> { %v329_v41 = vpop.permute.xlu0 %328 }
 0x22c   : >> { %525 = vmatmul.mubr.msk.f32.vlgmr.msra.gmra.mrb[0].mxu0 %vm207_vm0, %v329_v41 }
 0x2ff   : >> { %v398_v42 = vpop.f32.mrb[0].mxu0 }
 0x300   : >> { %v399_v43 = vadd.f32 %v398_v42, %v897_v26  ;;  %v526_v44 = vpop.f32.mrb[1].mxu0 }
 0x302   : >> { %410 = vrot.lane.b32.xlu0 %v399_v43, %s763_s28  ;;  %v402_v46 = vadd.f32 %v399_v43, %v326_v45 }
 0x304   : >> { %v482_v47 = vmul.f32 -1.442695, %v402_v46 }
 0x306   : >> { %598 = vpow2.f32 %v482_v47 }
 0x310   : >> { %v599_v48 = vpop.eup %598 }
 0x311   : >> { %v406_v49 = vadd.f32 1.0, %v599_v48 }
 0x313   : >> { %600 = vrcp.f32 %v406_v49 }
 0x31d   : >> { %v601_v50 = vpop.eup %600 }
 0x31e   : >> { %v420_v56 = vsub.f32 1.0, %v601_v50  ;;  %v426_v58 = vmul.f32 %v742_v36, %v601_v50 }
 0x374   : >> { %v411_v51 = vpop.permute.xlu0 %410 }
 0x375   : >> { %v413_v52 = vmul.f32 %v601_v50, %v411_v51 }
 0x377   : >> { %415 = vrot.lane.b32.xlu1 %v413_v52, %s763_s28 }
 0x3e9   : >> { %v416_v53 = vpop.permute.xlu1 %415 }
 0x3ea   : >> { %v418_v54 = vadd.f32 %v416_v53, %v326_v45 }
 0x3ec   : >> { %602 = vtanh.f32 %v418_v54 }
 0x3f6   : >> { %v603_v55 = vpop.eup %602 }
 0x3f7   : >> { %422 = vrot.lane.b32.xlu1 %v603_v55, %s760_s27 }
 0x468   : > { %321 = sbr.rel (!%p318_p3) target bundleno = 440 (0x1b8), region = 92 }
 0x469   : >> { %v423_v57 = vpop.permute.xlu1 %422 }
 0x46a   : >> { %v425_v59 = vmul.f32 %v423_v57, %v420_v56 }
 0x46c   : >> { %v427_v60 = vadd.f32 %v426_v58, %v425_v59  }
 0x46e   : >> { %v741_v36 = vmov %v427_v60   ;;  %v749_v35 = vmov (%p318_p3), %v427_v60  }
 0x46f PF: > { %s764_s30 = smov 96   ;;  %vm433_vm4 = vcmask 253952   ;;  %s432_s12 = scalar_lea.vmem [#allocation11], %s738_s0  ;;  %v961_v34 = vmov %v750_v35  ;;  %v750_v35 = vphi %v748_v35, %v749_v35  }
 0x470   : > { %429 = vrot.lane.b32.xlu0 %v750_v35, %s764_s30  ;;  %s311_s0 = sadd.s32 1, %s738_s0  }
 0x471   : > { %p308_p4 = scmp.ge.s32.totalorder %s311_s0, 2  }
 0x472   :  { %s765_s13 = smov (%p308_p4), [#allocation11]  }
 0x473   :  { %s441_s14 = sshll.u32 (%p308_p4), %s765_s13, 4  ;;  %s442_s14 = int_to_ptr.vmem [resolvable:$true] %s441_s14 }
 0x474   :  { %s682_s16 = scalar_lea.vmem (%p308_p4), %s442_s14, 32  ;;  %p687_p6 = scmp.lt.s32.totalorder (%p308_p4), %s442_s14, %s442_s14 }
 0x475   :  { %p683_p5 = scmp.ne.s32.totalorder (%p308_p4), %s442_s14, %s682_s16  ;;  %p688_p7 = scmp.lt.s32.totalorder (%p308_p4), %s682_s16, %s682_s16 }
 0x477   :  { %p689_p8 = por (%p308_p4), %p688_p7, %p687_p6 }
 0x479   :  { %p690_p9 = pnand (%p308_p4), %p689_p8, %p683_p5 }
 0x4dd   :  { %310 = sbr.rel (!%p308_p4) target bundleno = 424 (0x1a8), region = 103 }
 0x4e2   : > { %v430_v61 = vpop.permute.xlu0 %429 }
 0x4e3   : > { %434 = vst.msk [vmem:[%s432_s12] sm:$0x1] %vm433_vm4, %v430_v61 }
 0x4e4   :  { %693 = shalt.err (!%p690_p9)
}
 0x4e5   :  { %s694_s8 = scalar_lea.hbm %s960_s10, 32 }
 0x4e6   :  { %p695_p10 = scmp.ne.s32.totalorder %s960_s10, %s694_s8  ;;  %p698_p11 = scmp.lt.u32.totalorder %s694_s8, %s960_s10 }
 0x4e8   :  { %p700_p12 = pnand %p698_p11, %p695_p10 }
 0x4ea   :  { %703 = shalt.err (!%p700_p12)
}
 0x4eb   :  { %444 = dma.vmem_to_hbm [thread:$0]  %s442_s14, 32, %s960_s10, [#allocation5]  }
 0x4ec   :  { %730 = dma.done.wait [#allocation5], 32  }
 0x4ed   :  { %731 = vsyncadd [#allocation5], 4294967264 }
 0x4ee   :  { %448 = vsyncpa [#allocation4], 1 }
 0x4ef   :  { %449 = vsyncpa [#allocation9], 1 }
 0x4f0   :  { %450 = vsyncpa [#allocation5], 1 }
 0x4f1   :  { %451 = vsyncpa [#allocation6], 1 }

</bundles_post_ra>
